<compile_context>
chip_gen: v7x
topology: tpu7x:2x2x1
jax: 0.10.0
libtpu: 0.0.40
codegen_flags: <defaults>
</compile_context>

<pallas_src>
import functools

import jax
import jax.numpy as jnp
from jax.experimental import pallas as pl
from jax.experimental.pallas import tpu as pltpu


def cross_attention_kernel(x_ref, y_ref, wq_ref, wkv_ref, wo_ref, temp_ref,
                           mask_ref, o_ref, *, batch_block, approx_recip):
    # x_ref: (bb, c, hw)   y_ref: (bb, ckv, hw)   o_ref: (bb, c, hw)
    # wq_ref: (c, c)  wkv_ref: (2c, ckv)  wo_ref: (c, c)
    # temp_ref: (c, 1) per-q-channel temperature; mask_ref: (c, c) additive 0/-1e30.
    c = wq_ref.shape[0]

    wq = wq_ref[...]                                   # keep native (bf16 stays bf16)
    wkv = wkv_ref[...]
    wo = wo_ref[...]
    temp_row = temp_ref[...].astype(jnp.float32)       # (c, 1)
    mask = mask_ref[...]                               # (c, c) f32 additive head mask
    cmp_dtype = x_ref.dtype                            # MXU operand dtype downstream
    eps2 = jnp.float32(1e-24)                          # (F.normalize eps = 1e-12)^2

    for j in range(batch_block):                       # short static unroll
        xj = x_ref[j]                                  # (c,  hw) contiguous tile
        yj = y_ref[j]                                  # (ckv, hw)

        # 1x1 convs == channel matmuls (MXU, f32 accumulation).
        q = jnp.dot(wq, xj, preferred_element_type=jnp.float32)     # (c,  hw) f32
        kv = jnp.dot(wkv, yj, preferred_element_type=jnp.float32)   # (2c, hw) f32
        k = kv[:c]
        v = kv[c:]

        # F.normalize(dim=-1): x * rsqrt(max(sum x^2, eps^2)) == x / max(||x||, eps)
        # (EUP rsqrt); per-head temperature folded into q's scale.
        q_scale = jax.lax.rsqrt(
            jnp.maximum(jnp.sum(q * q, axis=-1, keepdims=True), eps2)) * temp_row
        k_scale = jax.lax.rsqrt(
            jnp.maximum(jnp.sum(k * k, axis=-1, keepdims=True), eps2))
        qn = (q * q_scale).astype(cmp_dtype)
        kn = (k * k_scale).astype(cmp_dtype)

        # Fused (c, c) QK^T for all heads at once; block-diagonal additive mask makes
        # the full-row softmax equal the per-head softmax (off-head probs underflow).
        attn = jax.lax.dot_general(qn, kn, (((1,), (1,)), ((), ())),
                                   preferred_element_type=jnp.float32)   # (c, c)
        attn = attn + mask
        attn = attn - jnp.max(attn, axis=-1, keepdims=True)
        p = jnp.exp(attn)
        p = p * pl.reciprocal(jnp.sum(p, axis=-1, keepdims=True), approx=approx_recip)

        # attn @ V and project_out 1x1 conv, operands kept in the compute dtype.
        out = jnp.dot(p.astype(cmp_dtype), v.astype(cmp_dtype),
                      preferred_element_type=jnp.float32)                # (c, hw)
        res = jnp.dot(wo, out.astype(wo.dtype),
                      preferred_element_type=jnp.float32)                # (c, hw)
        o_ref[j] = res.astype(o_ref.dtype)


def _vmem_bytes_estimate(bb, c, ckv, hw, in_itemsize, out_itemsize, w_bytes):
    # Double-buffered input/output blocks + resident weights/mask/temperature +
    # f32 intermediates of the one in-flight batch (q, kv, qn, kn, attn, p, out, res).
    blocks = 2 * (bb * (c + ckv) * hw * in_itemsize + bb * c * hw * out_itemsize)
    per_batch_f32 = (8 * c * hw + 2 * c * c) * 4
    return blocks + w_bytes + per_batch_f32 + (1 << 20)


def _pick_batch_block(b, c, ckv, hw, in_itemsize, out_itemsize, w_bytes,
                      vmem_budget=24 << 20, max_unroll=8):
    """Largest divisor of b that fits the VMEM budget, preferring >= 2 grid steps
    so v7x's two TensorCores both get work on the 'parallel' batch axis."""
    candidates = [bb for bb in range(1, min(b, max_unroll) + 1)
                  if b % bb == 0 and
                  _vmem_bytes_estimate(bb, c, ckv, hw, in_itemsize,
                                       out_itemsize, w_bytes) <= vmem_budget]
    if not candidates:
        return 1
    multi_step = [bb for bb in candidates if b // bb >= 2]
    return max(multi_step) if multi_step else max(candidates)


def cross_attention(x, y, wq, wkv, wo, temperature, num_heads):
    b, c, h, w = x.shape
    _, ckv, _, _ = y.shape
    hw = h * w
    assert c % num_heads == 0
    d = c // num_heads

    # Free reshapes only — no transposes on the host side.
    x3 = x.reshape(b, c, hw)
    y3 = y.reshape(b, ckv, hw)

    # Grid-invariant constants: per-q-channel temperature and additive head mask.
    temp_row = jnp.repeat(temperature.reshape(num_heads, 1).astype(jnp.float32),
                          d, axis=0)                                    # (c, 1)
    head_id = jnp.arange(c, dtype=jnp.int32) // d
    mask = jnp.where(head_id[:, None] == head_id[None, :],
                     jnp.float32(0.0), jnp.float32(-1e30))              # (c, c)

    in_itemsize = jnp.dtype(x.dtype).itemsize
    out_itemsize = in_itemsize
    w_bytes = ((wq.size + wkv.size + wo.size) * jnp.dtype(wq.dtype).itemsize
               + (temp_row.size + mask.size) * 4)

    bb = _pick_batch_block(b, c, ckv, hw, in_itemsize, out_itemsize, w_bytes)
    nblk = b // bb
    approx_recip = in_itemsize < 4            # exact reciprocal for f32 outputs

    est = _vmem_bytes_estimate(bb, c, ckv, hw, in_itemsize, out_itemsize, w_bytes)
    vmem_limit = int(min(max(2 * est, 32 << 20), 64 << 20))   # v7x-safe cap

    # Advisory cost estimate (wq, wkv, QK^T, attn@V, wo are the five matmuls).
    flops = 2 * b * hw * (4 * c * c + 2 * c * ckv)
    transcendentals = b * (c * c + 3 * c)
    bytes_accessed = (b * (c + ckv) * hw * in_itemsize + b * c * hw * out_itemsize
                      + w_bytes)

    kern = functools.partial(cross_attention_kernel, batch_block=bb,
                             approx_recip=approx_recip)

    out3 = pl.pallas_call(
        kern,
        out_shape=jax.ShapeDtypeStruct((b, c, hw), x.dtype),
        grid_spec=pltpu.PrefetchScalarGridSpec(
            num_scalar_prefetch=0,
            grid=(nblk,),
            in_specs=[
                pl.BlockSpec((bb, c, hw), lambda i: (i, 0, 0)),     # x block
                pl.BlockSpec((bb, ckv, hw), lambda i: (i, 0, 0)),   # y block
                pl.BlockSpec((c, c), lambda i: (0, 0)),             # wq
                pl.BlockSpec((2 * c, ckv), lambda i: (0, 0)),       # wkv
                pl.BlockSpec((c, c), lambda i: (0, 0)),             # wo
                pl.BlockSpec((c, 1), lambda i: (0, 0)),             # temperature/row
                pl.BlockSpec((c, c), lambda i: (0, 0)),             # additive head mask
            ],
            out_specs=pl.BlockSpec((bb, c, hw), lambda i: (i, 0, 0)),
        ),
        compiler_params=pltpu.CompilerParams(
            dimension_semantics=("parallel",),
            vmem_limit_bytes=vmem_limit),
        cost_estimate=pl.CostEstimate(flops=int(flops),
                                      transcendentals=int(transcendentals),
                                      bytes_accessed=int(bytes_accessed)),
    )(x3, y3, wq, wkv, wo, temp_row, mask)

    # TODO(synk): for very large h*w, add an hw-tiled "arbitrary" grid axis with
    # two-pass normalization so per-step slabs fit v7x's 64 MiB VMEM.
    return out3.reshape(b, c, h, w)


def cross_attention_ref(x, y, wq, wkv, wo, temperature, num_heads):
    """Pure-JAX reference mirroring the PyTorch forward."""
    b, c, h, w = x.shape
    _, ckv, _, _ = y.shape
    hw = h * w
    d = c // num_heads
    xf = x.reshape(b, c, hw)
    yf = y.reshape(b, ckv, hw)
    q = jnp.einsum("oc,bcs->bos", wq, xf)
    kv = jnp.einsum("oc,bcs->bos", wkv, yf)
    k, v = kv[:, :c], kv[:, c:]
    q = q.reshape(b, num_heads, d, hw)
    k = k.reshape(b, num_heads, d, hw)
    v = v.reshape(b, num_heads, d, hw)
    eps = 1e-12
    q = q / jnp.maximum(jnp.linalg.norm(q, axis=-1, keepdims=True), eps)
    k = k / jnp.maximum(jnp.linalg.norm(k, axis=-1, keepdims=True), eps)
    attn = jnp.einsum("bhdk,bhek->bhde", q, k) * temperature.reshape(1, num_heads, 1, 1)
    attn = jax.nn.softmax(attn, axis=-1)
    out = jnp.einsum("bhde,bhek->bhdk", attn, v).reshape(b, c, hw)
    out = jnp.einsum("oc,bcs->bos", wo, out)
    return out.reshape(b, c, h, w)


if __name__ == "__main__":
    # Module config: dim=32, dim_kv=16, num_heads=4; input spatial 8x8, batch 2.
    b, dim, dim_kv, num_heads, h, w = 2, 32, 16, 4, 8, 8

    key = jax.random.PRNGKey(0)
    kx, ky, kq, kkv, ko = jax.random.split(key, 5)

    x = jax.random.normal(kx, (b, dim, h, w), dtype=jnp.float32)
    y = jax.random.normal(ky, (b, dim_kv, h, w), dtype=jnp.float32)

    # Deterministic synthetic parameters (Conv2d 1x1 weights squeezed to matrices).
    wq = 0.1 * jax.random.normal(kq, (dim, dim), dtype=jnp.float32)
    wkv = 0.1 * jax.random.normal(kkv, (2 * dim, dim_kv), dtype=jnp.float32)
    wo = 0.1 * jax.random.normal(ko, (dim, dim), dtype=jnp.float32)
    temperature = jnp.ones((num_heads, 1, 1), dtype=jnp.float32)  # nn.Parameter init

    out = cross_attention(x, y, wq, wkv, wo, temperature, num_heads)
    out = jax.block_until_ready(out)

    ref = cross_attention_ref(x, y, wq, wkv, wo, temperature, num_heads)
    assert out.shape == (b, dim, h, w)
    assert jnp.allclose(out, ref, atol=2e-4, rtol=2e-4), "mismatch vs reference"

    print("KERNEL_OK")
</pallas_src>

<mosaic_0001>
module attributes {stable_mosaic.version = 11 : i64} {
  func.func @cross_attention_kernel(%arg0: i32, %arg1: memref<1x32x64xf32, #tpu.memory_space<vmem>>, %arg2: memref<1x16x64xf32, #tpu.memory_space<vmem>>, %arg3: memref<32x32xf32, #tpu.memory_space<vmem>>, %arg4: memref<64x16xf32, #tpu.memory_space<vmem>>, %arg5: memref<32x32xf32, #tpu.memory_space<vmem>>, %arg6: memref<32x1xf32, #tpu.memory_space<vmem>>, %arg7: memref<32x32xf32, #tpu.memory_space<vmem>>, %arg8: memref<1x32x64xf32, #tpu.memory_space<vmem>>) attributes {dimension_semantics = [#tpu.dimension_semantics<parallel>], iteration_bounds = array<i64: 2>, scalar_prefetch = 0 : i64, scratch_operands = 0 : i64, tpu.core_type = #tpu.core_type<tc>, window_params = [{transform_indices = @transform_0, window_bounds = array<i64: 1, 32, 64>}, {transform_indices = @transform_1, window_bounds = array<i64: 1, 16, 64>}, {pipeline_mode = #tpu.pipeline_mode<synchronous>, transform_indices = @transform_2, window_bounds = array<i64: 32, 32>}, {pipeline_mode = #tpu.pipeline_mode<synchronous>, transform_indices = @transform_3, window_bounds = array<i64: 64, 16>}, {pipeline_mode = #tpu.pipeline_mode<synchronous>, transform_indices = @transform_4, window_bounds = array<i64: 32, 32>}, {pipeline_mode = #tpu.pipeline_mode<synchronous>, transform_indices = @transform_5, window_bounds = array<i64: 32, 1>}, {pipeline_mode = #tpu.pipeline_mode<synchronous>, transform_indices = @transform_6, window_bounds = array<i64: 32, 32>}, {transform_indices = @transform_7, window_bounds = array<i64: 1, 32, 64>}]} {
    %c0 = arith.constant 0 : index
    %c0_0 = arith.constant 0 : index
    %0 = vector.load %arg3[%c0, %c0_0] : memref<32x32xf32, #tpu.memory_space<vmem>>, vector<32x32xf32>
    %c0_1 = arith.constant 0 : index
    %c0_2 = arith.constant 0 : index
    %1 = vector.load %arg4[%c0_1, %c0_2] : memref<64x16xf32, #tpu.memory_space<vmem>>, vector<64x16xf32>
    %c0_3 = arith.constant 0 : index
    %c0_4 = arith.constant 0 : index
    %2 = vector.load %arg5[%c0_3, %c0_4] : memref<32x32xf32, #tpu.memory_space<vmem>>, vector<32x32xf32>
    %c0_5 = arith.constant 0 : index
    %c0_6 = arith.constant 0 : index
    %3 = vector.load %arg6[%c0_5, %c0_6] : memref<32x1xf32, #tpu.memory_space<vmem>>, vector<32x1xf32>
    %c0_7 = arith.constant 0 : index
    %c0_8 = arith.constant 0 : index
    %4 = vector.load %arg7[%c0_7, %c0_8] : memref<32x32xf32, #tpu.memory_space<vmem>>, vector<32x32xf32>
    %c0_9 = arith.constant 0 : index
    %c0_10 = arith.constant 0 : index
    %c0_11 = arith.constant 0 : index
    %5 = vector.load %arg1[%c0_9, %c0_10, %c0_11] : memref<1x32x64xf32, #tpu.memory_space<vmem>>, vector<1x32x64xf32>
    %6 = vector.shape_cast %5 : vector<1x32x64xf32> to vector<32x64xf32>
    %c0_12 = arith.constant 0 : index
    %c0_13 = arith.constant 0 : index
    %c0_14 = arith.constant 0 : index
    %7 = vector.load %arg2[%c0_12, %c0_13, %c0_14] : memref<1x16x64xf32, #tpu.memory_space<vmem>>, vector<1x16x64xf32>
    %8 = vector.shape_cast %7 : vector<1x16x64xf32> to vector<16x64xf32>
    %cst = arith.constant dense<0.000000e+00> : vector<32x64xf32>
    %9 = tpu.matmul %0, %6, %cst {dimension_numbers = #tpu.dot_dimension_numbers<[1], [0], [0], [1], [0, 0, 1, 1], [], []>} : vector<32x32xf32>, vector<32x64xf32>, vector<32x64xf32> -> vector<32x64xf32>
    %cst_15 = arith.constant dense<0.000000e+00> : vector<64x64xf32>
    %10 = tpu.matmul %1, %8, %cst_15 {dimension_numbers = #tpu.dot_dimension_numbers<[1], [0], [0], [1], [0, 0, 1, 1], [], []>} : vector<64x16xf32>, vector<16x64xf32>, vector<64x64xf32> -> vector<64x64xf32>
    %11 = vector.extract_strided_slice %10 {offsets = [0, 0], sizes = [32, 64], strides = [1, 1]} : vector<64x64xf32> to vector<32x64xf32>
    %12 = vector.extract_strided_slice %10 {offsets = [32, 0], sizes = [32, 64], strides = [1, 1]} : vector<64x64xf32> to vector<32x64xf32>
    %13 = arith.mulf %9, %9 : vector<32x64xf32>
    %cst_16 = arith.constant dense<0.000000e+00> : vector<32xf32>
    %14 = vector.multi_reduction <add>, %13, %cst_16 [1] : vector<32x64xf32> to vector<32xf32>
    %15 = vector.shape_cast %14 : vector<32xf32> to vector<32x1xf32>
    %cst_17 = arith.constant 1.000000e-24 : f32
    %16 = vector.broadcast %cst_17 : f32 to vector<32x1xf32>
    %17 = arith.maximumf %15, %16 : vector<32x1xf32>
    %18 = math.rsqrt %17 : vector<32x1xf32>
    %19 = arith.mulf %18, %3 : vector<32x1xf32>
    %20 = arith.mulf %11, %11 : vector<32x64xf32>
    %cst_18 = arith.constant dense<0.000000e+00> : vector<32xf32>
    %21 = vector.multi_reduction <add>, %20, %cst_18 [1] : vector<32x64xf32> to vector<32xf32>
    %22 = vector.shape_cast %21 : vector<32xf32> to vector<32x1xf32>
    %cst_19 = arith.constant 1.000000e-24 : f32
    %23 = vector.broadcast %cst_19 : f32 to vector<32x1xf32>
    %24 = arith.maximumf %22, %23 : vector<32x1xf32>
    %25 = math.rsqrt %24 : vector<32x1xf32>
    %26 = vector.broadcast %19 : vector<32x1xf32> to vector<32x64xf32>
    %27 = arith.mulf %9, %26 : vector<32x64xf32>
    %28 = vector.broadcast %25 : vector<32x1xf32> to vector<32x64xf32>
    %29 = arith.mulf %11, %28 : vector<32x64xf32>
    %cst_20 = arith.constant dense<0.000000e+00> : vector<32x32xf32>
    %30 = tpu.matmul %27, %29, %cst_20 {dimension_numbers = #tpu.dot_dimension_numbers<[1], [1], [0], [0], [0, 0, 1, 0], [], []>} : vector<32x64xf32>, vector<32x64xf32>, vector<32x32xf32> -> vector<32x32xf32>
    %31 = arith.addf %30, %4 : vector<32x32xf32>
    %cst_21 = arith.constant dense<0xFF800000> : vector<32xf32>
    %32 = vector.multi_reduction <maximumf>, %31, %cst_21 [1] : vector<32x32xf32> to vector<32xf32>
    %33 = vector.shape_cast %32 : vector<32xf32> to vector<32x1xf32>
    %34 = vector.broadcast %33 : vector<32x1xf32> to vector<32x32xf32>
    %35 = arith.subf %31, %34 : vector<32x32xf32>
    %36 = math.exp %35 : vector<32x32xf32>
    %cst_22 = arith.constant dense<0.000000e+00> : vector<32xf32>
    %37 = vector.multi_reduction <add>, %36, %cst_22 [1] : vector<32x32xf32> to vector<32xf32>
    %38 = vector.shape_cast %37 : vector<32xf32> to vector<32x1xf32>
    %39 = tpu.reciprocal %38 : vector<32x1xf32> -> vector<32x1xf32>
    %40 = vector.broadcast %39 : vector<32x1xf32> to vector<32x32xf32>
    %41 = arith.mulf %36, %40 : vector<32x32xf32>
    %cst_23 = arith.constant dense<0.000000e+00> : vector<32x64xf32>
    %42 = tpu.matmul %41, %12, %cst_23 {dimension_numbers = #tpu.dot_dimension_numbers<[1], [0], [0], [1], [0, 0, 1, 1], [], []>} : vector<32x32xf32>, vector<32x64xf32>, vector<32x64xf32> -> vector<32x64xf32>
    %cst_24 = arith.constant dense<0.000000e+00> : vector<32x64xf32>
    %43 = tpu.matmul %2, %42, %cst_24 {dimension_numbers = #tpu.dot_dimension_numbers<[1], [0], [0], [1], [0, 0, 1, 1], [], []>} : vector<32x32xf32>, vector<32x64xf32>, vector<32x64xf32> -> vector<32x64xf32>
    %c0_25 = arith.constant 0 : index
    %c0_26 = arith.constant 0 : index
    %c0_27 = arith.constant 0 : index
    %44 = vector.load %arg8[%c0_25, %c0_26, %c0_27] : memref<1x32x64xf32, #tpu.memory_space<vmem>>, vector<1x32x64xf32>
    %45 = vector.shape_cast %44 : vector<1x32x64xf32> to vector<32x64xf32>
    %46 = vector.shape_cast %43 : vector<32x64xf32> to vector<1x32x64xf32>
    tpu.vector_store %arg8[%c0_25, %c0_26, %c0_27], %46 {strides = array<i32>} : memref<1x32x64xf32, #tpu.memory_space<vmem>>, vector<1x32x64xf32>,
    return
  }
  func.func @transform_0(%arg0: i32) -> (i32, i32, i32) {
    %c0_i32 = arith.constant 0 : i32
    %c0_i32_0 = arith.constant 0 : i32
    %c0_i32_1 = arith.constant 0 : i32
    return %arg0, %c0_i32, %c0_i32_0 : i32, i32, i32
  }
  func.func @transform_1(%arg0: i32) -> (i32, i32, i32) {
    %c0_i32 = arith.constant 0 : i32
    %c0_i32_0 = arith.constant 0 : i32
    %c0_i32_1 = arith.constant 0 : i32
    return %arg0, %c0_i32, %c0_i32_0 : i32, i32, i32
  }
  func.func @transform_2(%arg0: i32) -> (i32, i32) {
    %c0_i32 = arith.constant 0 : i32
    %c0_i32_0 = arith.constant 0 : i32
    %c0_i32_1 = arith.constant 0 : i32
    return %c0_i32, %c0_i32_0 : i32, i32
  }
  func.func @transform_3(%arg0: i32) -> (i32, i32) {
    %c0_i32 = arith.constant 0 : i32
    %c0_i32_0 = arith.constant 0 : i32
    %c0_i32_1 = arith.constant 0 : i32
    return %c0_i32, %c0_i32_0 : i32, i32
  }
  func.func @transform_4(%arg0: i32) -> (i32, i32) {
    %c0_i32 = arith.constant 0 : i32
    %c0_i32_0 = arith.constant 0 : i32
    %c0_i32_1 = arith.constant 0 : i32
    return %c0_i32, %c0_i32_0 : i32, i32
  }
  func.func @transform_5(%arg0: i32) -> (i32, i32) {
    %c0_i32 = arith.constant 0 : i32
    %c0_i32_0 = arith.constant 0 : i32
    %c0_i32_1 = arith.constant 0 : i32
    return %c0_i32, %c0_i32_0 : i32, i32
  }
  func.func @transform_6(%arg0: i32) -> (i32, i32) {
    %c0_i32 = arith.constant 0 : i32
    %c0_i32_0 = arith.constant 0 : i32
    %c0_i32_1 = arith.constant 0 : i32
    return %c0_i32, %c0_i32_0 : i32, i32
  }
  func.func @transform_7(%arg0: i32) -> (i32, i32, i32) {
    %c0_i32 = arith.constant 0 : i32
    %c0_i32_0 = arith.constant 0 : i32
    %c0_i32_1 = arith.constant 0 : i32
    return %arg0, %c0_i32, %c0_i32_0 : i32, i32, i32
  }
}

</mosaic_0001>

<bundles_post_ra>
// kernel: tpu_custom_call.1
= control target key start
LH: loop header
LB: loop body
LE: loop exit
PB: predicated region body
PF: predicated region fallthrough
CT: control target
= control target key end

     0   :  { %12 = vsyncpa [#allocation3], 0  ;;  %s1917_s0 = inlined_call_operand.vmem [shape: f32[2,32,64], index: 0, kind: input, shape index: {}]   ;;  %s1918_s1 = inlined_call_operand.vmem [shape: f32[2,16,64], index: 1, kind: input, shape index: {}]   ;;  %s1919_s2 = inlined_call_operand.hbm [shape: f32[32,32], index: 2, kind: input, shape index: {}]   ;;  %s1920_s3 = inlined_call_operand.vmem [shape: f32[64,16], index: 3, kind: input, shape index: {}]   ;;  %s1921_s4 = inlined_call_operand.vmem [shape: f32[32,32], index: 4, kind: input, shape index: {}]   ;;  %s1922_s5 = inlined_call_operand.vmem [shape: f32[32,1], index: 5, kind: input, shape index: {}]   ;;  %s1923_s6 = inlined_call_operand.hbm [shape: f32[32,32], index: 6, kind: input, shape index: {}]   ;;  %s1924_s7 = inlined_call_operand.hbm [shape: f32[2,32,64], index: 7, kind: output, shape index: {}]  }
   0x1   :  { %13 = vsyncpa [#allocation6], 0 }
   0x2   :  { %14 = vsyncpa [#allocation4], 0 }
   0x3   :  { %16 = vsyncpa [#allocation4 + $0x1], 0  ;;  %s1605_s24 = smov 0   ;;  %s1607_s25 = smov 0  }
   0x4   :  { %s1609_s26 = smov 0   ;;  %s1611_s27 = smov 0  }
   0x5 LB: > { %s1626_s28 = sadd.s32 4294967295, %s1555_s27   ;;  %s1127_s29 = sadd.s32 4294967294, %s1555_s27   ;;  %s1555_s27 = sphi %s1611_s27, %s1944_s27   ;;  %s1551_s26 = sphi %s1609_s26, %s1943_s26   ;;  %s1547_s25 = sphi %s1607_s25, %s1942_s25   ;;  %s1543_s24 = sphi %s1605_s24, %s1941_s24  }
   0x6   : > { %s1630_s30 = sadd.s32 1, %s1555_s27   ;;  %s186_s8 = sadd.s32 1, %s1551_s26 }
   0x7   : > { %s183_s9 = ssub.s32 %s1555_s27, %s1630_s30  ;;  %p196_p0 = scmp.ne.s32.totalorder %s1551_s26, %s1547_s25 }
   0x8   : > { %p184_p1 = scmp.eq.s32.totalorder %s183_s9, 0  ;;  %p197_p2 = scmp.eq.s32.totalorder %s1626_s28, 1 }
   0x9   : > { %p202_p3 = scmp.ne.s32.totalorder %s1547_s25, %s1543_s24  ;;  %p203_p4 = scmp.eq.s32.totalorder %s1127_s29, 1 }
   0xa   : > { %s1641_s10 = scalar_select %p184_p1, %s1551_s26, %s186_s8  }
   0xb   : > { %p1643_p5 = por %p197_p2, %p196_p0  ;;  %p1647_p6 = por %p203_p4, %p202_p3 }
   0xc   : > { %1928 = sst [smem:[#allocation11_spill]] %s1641_s10  ;;  %p1128_p7 = scmp.ge.s32.totalorder %s1555_s27, 1 }
   0xd   : > { %s1929_s11 = scalar_select %p1643_p5, 1, 0 }
   0xe   : > { %s1930_s12 = scalar_select %p1647_p6, 1, 0 }
   0xf   : > { %p210_p8 = scmp.lt.s32.totalorder %s1555_s27, 3  ;;  %p1925_p9 = scmp.eq.s32.totalorder %s1626_s28, 0 }
  0x10   : > { %s1557_s14 = smov [#allocation2]   ;;  %s1558_s17 = smov [#allocation5]  }
  0x11   : > { %p1654_p10 = pnand %p1128_p7, %p210_p8  ;;  %s222_s15 = sshll.u32 %s1557_s14, 4  ;;  %s223_s15 = int_to_ptr.vmem [resolvable:$true] %s222_s15 }
  0x12   : > { %s244_s18 = sshll.u32 %s1558_s17, 4  ;;  %s1429_s21 = scalar_lea.hbm %s1919_s2, 512  ;;  %s1666_s18 = int_to_ptr.vmem [resolvable:$true] %s244_s18 }
  0x13   : > { %s1931_s13 = scalar_select %p1654_p10, 1, 0 }
  0x14   : > { %p1340_p11 = pneg %p1654_p10  ;;  %p1430_p13 = scmp.ne.s32.totalorder %s1919_s2, %s1429_s21 }
  0x15   : > { %p1436_p3 = scmp.lt.u32.totalorder %s1429_s21, %s1919_s2 }
  0x16   : > { %p1662_p12 = pnand %p1925_p9, %p1340_p11 }
  0x18   : > { %p1431_p0 = pneg %p1662_p12 }
  0x1a   : > { %p1432_p1 = pnand %p1431_p0, %p1430_p13 }
  0x1c   : > { %p1433_p2 = pneg %p1432_p1 }
  0x1e   : > { %p1438_p4 = pnand %p1436_p3, %p1433_p2 }
  0x20   : > { %1441 = shalt.err (!%p1438_p4)
}
  0x21   : > { %s1442_s9 = scalar_lea.vmem %s223_s15, 512  ;;  %p1450_p9 = scmp.lt.s32.totalorder %s223_s15, %s223_s15 }
  0x22   : > { %p1443_p7 = scmp.ne.s32.totalorder %s223_s15, %s1442_s9  ;;  %p1451_p6 = scmp.lt.s32.totalorder %s1442_s9, %s1442_s9 }
  0x24   : > { %p1445_p8 = pnand %p1443_p7, %p1431_p0  ;;  %p1452_p5 = por %p1451_p6, %p1450_p9 }
  0x26   : > { %p1446_p11 = pneg %p1445_p8 }
  0x28   : > { %p1453_p10 = pnand %p1452_p5, %p1446_p11 }
  0x2a   : > { %1456 = shalt.err (!%p1453_p10)
}
  0x2b   : > { %s1559_s14 = smov 128   ;;  %s1560_s17 = smov 8  }
  0x2c   : > { %1343 = dma.hbm_to_vmem [thread:$0]  (!%p1662_p12), %s1919_s2, 512, %s223_s15, [#allocation3], %s1559_s14, %s1559_s14, %s1560_s17  }
  0x2d   : > { %s1457_s23 = scalar_lea.hbm %s1923_s6, 512 }
  0x2e   : > { %p1458_p13 = scmp.ne.s32.totalorder %s1923_s6, %s1457_s23  ;;  %p1464_p9 = scmp.lt.u32.totalorder %s1457_s23, %s1923_s6 }
  0x30   : > { %p1460_p5 = pnand %p1458_p13, %p1431_p0 }
  0x32   : > { %p1461_p6 = pneg %p1460_p5 }
  0x34   : > { %p1466_p10 = pnand %p1464_p9, %p1461_p6 }
  0x36   : > { %1469 = shalt.err (!%p1466_p10)
}
  0x37   : > { %s1470_s15 = scalar_lea.vmem %s1666_s18, 512  ;;  %p1478_p4 = scmp.lt.s32.totalorder %s1666_s18, %s1666_s18 }
  0x38   : > { %p1471_p1 = scmp.ne.s32.totalorder %s1666_s18, %s1470_s15  ;;  %p1479_p7 = scmp.lt.s32.totalorder %s1470_s15, %s1470_s15 }
  0x3a   : > { %p1473_p2 = pnand %p1471_p1, %p1431_p0  ;;  %p1480_p8 = por %p1479_p7, %p1478_p4 }
  0x3c   : > { %p1474_p3 = pneg %p1473_p2 }
  0x3e   : > { %p1481_p11 = pnand %p1480_p8, %p1474_p3 }
  0x40   : > { %1484 = shalt.err (!%p1481_p11)
}
  0x41   : > { %1346 = dma.hbm_to_vmem [thread:$0]  (!%p1662_p12), %s1923_s6, 512, %s1666_s18, [#allocation6], %s1559_s14, %s1559_s14, %s1560_s17  }
  0x42   : > { %p1933_p13 = scmp.ne.s32.totalorder %s1931_s13, 0 }
  0x43   : > { %p1934_p5 = scmp.eq.s32.totalorder (!%p1933_p13), %s1626_s28, 0 }
  0x44   : > { %276 = sbr.rel (%p1933_p13) target bundleno = 1596 (0x63c), region = 48 }
  0x4b   : > { %1530 = dma.done.wait (%p1934_p5), [#allocation3], 512   ;;  %p1935_p0 = pmov %p1934_p5 }
  0x4d   : > { %1532 = vsyncadd (%p1935_p0), [#allocation3], 4294966784  ;;  %p1936_p6 = pmov %p1935_p0 }
  0x4e   : > { %p1937_p9 = pmov %p1935_p0 }
  0x4f   : > { %1534 = dma.done.wait (%p1936_p6), [#allocation6], 512  }
  0x50   : > { %1536 = vsyncadd (%p1937_p9), [#allocation6], 4294966784  ;;  %p317_p10 = scmp.lt.s32.totalorder %s1626_s28, 1  ;;  %vm357_vm0 = vcmask 261120   ;;  %v327_v5 = vld [vmem:[#allocation2] sm:$0xff]  ;;  %vm455_vm1 = vcmask 130048  }
  0x51   : > { %1226 = vmatprep.mubr.msk.f32.mxu0 %vm357_vm0, %v327_v5  ;;  %v331_v9 = vld [vmem:[%s1920_s3] sm:$0xff]  ;;  %v332_v11 = vld [vmem:[%s1920_s3 + $0x8] sm:$0xff]  ;;  %v333_v13 = vld [vmem:[%s1920_s3 + $0x10] sm:$0xff]  ;;  %vm589_vm2 = vcmask 523264   ;;  %v1561_v41 = vmov 0   ;;  %s314_s9 = sand.u32 1, %s1547_s25  }
  0x52   : > { %s318_s16 = scalar_select %p317_p10, %s1626_s28, 1  ;;  %1236 = vmatprep.mubr.msk.f32.mxu1 %vm455_vm1, %v331_v9  ;;  %v328_v12 = vld [vmem:[#allocation2 + $0x8] sm:$0xff]  ;;  %v329_v14 = vld [vmem:[#allocation2 + $0x10] sm:$0xff]  ;;  %v334_v15 = vld [vmem:[%s1920_s3 + $0x18] sm:$0xff]  ;;  %1395 = vset.pattern.permute.xlu0 %v1561_v41 }
  0x53   : > { %v330_v16 = vld [vmem:[#allocation2 + $0x18] sm:$0xff]  ;;  %1396 = vset.pattern.permute.xlu1 %v1561_v41  ;;  %v335_v42 = vld [vmem:[%s1920_s3 + $0x20] sm:$0xff]  ;;  %v336_v43 = vld [vmem:[%s1920_s3 + $0x28] sm:$0xff]  ;;  %s1135_s15 = sshll.u32 %s314_s9, 5  ;;  %s1876_s17 = scalar_lea.sflag [#allocation4], %s314_s9 }
  0x54   : > { %s1173_s18 = sshll.u32 %s318_s16, 5  ;;  %s1174_s14 = sshll.u32 %s318_s16, 4  ;;  %v343_v54 = vld [vmem:[%s1922_s5] sm:$0xff]  ;;  %v344_v61 = vld [vmem:[%s1922_s5 + $0x8] sm:$0xff]  ;;  %v337_v63 = vld [vmem:[%s1920_s3 + $0x30] sm:$0xff] }
  0x55   : > { %s321_s20 = scalar_lea.vmem %s1917_s0, %s1173_s18  ;;  %s326_s23 = scalar_lea.vmem %s1918_s1, %s1174_s14  ;;  %vm1303_vm3 = vmpackc.low %vm589_vm2, %vm589_vm2 }
  0x56   : > { %v351_v0 = vld [vmem:[%s321_s20] sm:$0xff]  ;;  %v352_v1 = vld [vmem:[%s321_s20 + $0x8] sm:$0xff]  ;;  %v353_v2 = vld [vmem:[%s321_s20 + $0x10] sm:$0xff]  ;;  %s316_s10 = scalar_lea.vmem [#allocation7], %s1135_s15  ;;  %s1175_s16 = sshll.u32 %s1626_s28, 9 }
  0x57   : > { %v1290_v3 = vpack.c.bf16 %v352_v1, %v351_v0  ;;  %v354_v4 = vld [vmem:[%s321_s20 + $0x18] sm:$0xff]  ;;  %v355_v7 = vld [vmem:[%s326_s23] sm:$0xff]  ;;  %v356_v8 = vld [vmem:[%s326_s23 + $0x8] sm:$0xff]  ;;  %s1031_s19 = sshll.u32 %s316_s10, 4  ;;  %s1872_s13 = scalar_lea.hbm %s1924_s7, %s1175_s16  ;;  %s1867_s19 = int_to_ptr.vmem [resolvable:$true] %s1031_s19 }
  0x58   : > { %v1294_v6 = vpack.c.bf16 %v354_v4, %v353_v2  ;;  %v1298_v10 = vpack.c.bf16 %v356_v8, %v355_v7  ;;  %v338_v0 = vld [vmem:[%s1920_s3 + $0x38] sm:$0xff]  ;;  %s1485_s28 = scalar_lea.vmem %s1867_s19, 512  ;;  %p1938_p1 = scmp.ne.s32.totalorder %s1929_s11, 0 }
  0x59   : > { %1291 = vmatprep.subr.bf16.mxu0 %v1290_v3  ;;  %v346_v8 = vld [vmem:[%s1922_s5 + $0x18] sm:$0xff]  ;;  %p1486_p12 = scmp.ne.s32.totalorder %s1867_s19, %s1485_s28  ;;  %s1562_s20 = smov [#allocation7]  }
  0x5a   : > { %1293 = vmatpush3.bf16.msra.mxu0 %v1290_v3  ;;  %1299 = vmatprep.subr.bf16.mxu1 %v1298_v10  ;;  %v345_v3 = vld [vmem:[%s1922_s5 + $0x10] sm:$0xff]  ;;  %s1489_s21 = sshll.u32 %s1562_s20, 4  ;;  %s1490_s21 = int_to_ptr.vmem [resolvable:$false] %s1489_s21 }
  0x5b   : > { %1295 = vmatprep.subr.bf16.mxu0 %v1294_v6  ;;  %1301 = vmatpush3.bf16.msra.mxu1 %v1298_v10  ;;  %p1487_p2 = pnand %p1486_p12, %p1938_p1  ;;  %s1491_s22 = scalar_lea.vmem %s1490_s21, 1024 }
  0x5c   : > { %p1492_p4 = scmp.lt.s32.totalorder %s1867_s19, %s1490_s21  ;;  %p1493_p7 = scmp.lt.s32.totalorder %s1491_s22, %s1485_s28 }
  0x5d   : > { %p1488_p3 = pneg %p1487_p2 }
  0x5e   : > { %1297 = vmatpush3.bf16.msra.mxu0 %v1294_v6  ;;  %1237 = vmatmul.mubr.msk.f32.vlgmr.msra.gmra.mrb[0].mxu1 %vm455_vm1, %v332_v11  ;;  %p1494_p8 = por %p1493_p7, %p1492_p4 }
  0x5f   : > { %1239 = vmatprep.mubr.msk.f32.mxu1 %vm455_vm1, %v333_v13 }
  0x60   : > { %p1495_p11 = pnand %p1494_p8, %p1488_p3 }
  0x61   : > { %1227 = vmatmul.mubr.msk.f32.vlgmr.msra.gmra.mrb[0].mxu0 %vm357_vm0, %v328_v12 }
  0x62   : > { %1229 = vmatprep.mubr.msk.f32.mxu0 %vm357_vm0, %v329_v14  ;;  %1240 = vmatmul.mubr.msk.f32.gmra.mrb[2].mxu1 %vm455_vm1, %v334_v15 }
  0x63   : > { %1242 = vmatprep.mubr.msk.f32.mxu1 %vm455_vm1, %v335_v42 }
  0x65   : > { %1230 = vmatmul.mubr.msk.f32.gmra.mrb[2].mxu0 %vm357_vm0, %v330_v16 }
  0x66   : > { %1243 = vmatmul.mubr.msk.f32.gmra.mrb[4].mxu1 %vm455_vm1, %v336_v43 }
  0x67   : > { %1245 = vmatprep.mubr.msk.f32.mxu1 %vm455_vm1, %v337_v63 }
  0x6a   : > { %1246 = vmatmul.mubr.msk.f32.gmra.mrb[6].mxu1 %vm455_vm1, %v338_v0 }
 0x131   : > { %v1753_v17 = vpop.f32.mrb[0].mxu1 }
 0x132   : > { %v1757_v19 = vpop.f32.mrb[1].mxu1  ;;  %v615_v33 = vmul.f32 %v1753_v17, %v1753_v17 }
 0x133   : > { %v614_v29 = vmul.f32 %v1757_v19, %v1757_v19 }
 0x134   : > { %v1755_v18 = vpop.f32.mrb[0].mxu0  ;;  %v621_v39 = vsel %vm589_vm2, %v615_v33, 0.0 }
 0x135   : > { %v1759_v20 = vpop.f32.mrb[1].mxu0  ;;  %v1763_v22 = vpop.f32.mrb[2].mxu1  ;;  %v586_v23 = vmul.f32 %v1755_v18, %v1755_v18  ;;  %v618_v35 = vsel %vm589_vm2, %v614_v29, 0.0 }
 0x136   : > { %v585_v21 = vmul.f32 %v1759_v20, %v1759_v20  ;;  %v1770_v26 = vpop.f32.mrb[3].mxu1  ;;  %v617_v37 = vmul.f32 %v1763_v22, %v1763_v22 }
 0x137   : > { %v593_v31 = vsel %vm589_vm2, %v586_v23, 0.0  ;;  %v616_v34 = vmul.f32 %v1770_v26, %v1770_v26 }
 0x138   : > { %v1767_v24 = vpop.f32.mrb[2].mxu0  ;;  %v590_v25 = vsel %vm589_vm2, %v585_v21, 0.0  ;;  %v627_v40 = vsel %vm589_vm2, %v617_v37, 0.0  ;;  %v348_v37 = vld [vmem:[#allocation5 + $0x8] sm:$0xff] }
 0x139   : > { %591 = vadd.xlane.f32.xlu0 %v590_v25  ;;  %v1772_v27 = vpop.f32.mrb[3].mxu0  ;;  %v588_v28 = vmul.f32 %v1767_v24, %v1767_v24  ;;  %v624_v38 = vsel %vm589_vm2, %v616_v34, 0.0 }
 0x13a   : > { %v587_v30 = vmul.f32 %v1772_v27, %v1772_v27 }
 0x13b   : > { %v599_v36 = vsel %vm589_vm2, %v588_v28, 0.0  ;;  %v1244_v28 = vpop.f32.mrb[4].mxu1 }
 0x13c   : > { %v596_v32 = vsel %vm589_vm2, %v587_v30, 0.0  ;;  %v566_v29 = vpop.f32.mrb[5].mxu1 }
 0x13d   : > { %594 = vadd.xlane.f32.xlu0 %v593_v31  ;;  %597 = vadd.xlane.f32.xlu1 %v596_v32 }
 0x141   : > { %619 = vadd.xlane.f32.xlu0 %v618_v35  ;;  %600 = vadd.xlane.f32.xlu1 %v599_v36  ;;  %v1247_v35 = vpop.f32.mrb[6].mxu1 }
 0x142   : > { %v576_v36 = vpop.f32.mrb[7].mxu1 }
 0x145   : > { %625 = vadd.xlane.f32.xlu0 %v624_v38  ;;  %622 = vadd.xlane.f32.xlu1 %v621_v39  ;;  %v347_v38 = vld [vmem:[#allocation5] sm:$0xff] }
 0x149   : > { %628 = vadd.xlane.f32.xlu1 %v627_v40 }
 0x1c6   : > { %v592_v44 = vpop.xlane.xlu0 %591 }
 0x1c7   : > { %v602_v45 = vmax.f32 %v592_v44, 1e-24  ;;  %v350_v44 = vld [vmem:[#allocation5 + $0x18] sm:$0xff] }
 0x1c9   : > { %1397 = vrsqrt.f32 %v602_v45 }
 0x1ca   : > { %v595_v46 = vpop.xlane.xlu0 %594  ;;  %v598_v47 = vpop.xlane.xlu1 %597 }
 0x1cb   : > { %v603_v48 = vmax.f32 %v595_v46, 1e-24  ;;  %v604_v49 = vmax.f32 %v598_v47, 1e-24 }
 0x1cd   : > { %1399 = vrsqrt.f32 %v603_v48 }
 0x1ce   : > { %1401 = vrsqrt.f32 %v604_v49  ;;  %v620_v50 = vpop.xlane.xlu0 %619  ;;  %v601_v51 = vpop.xlane.xlu1 %600 }
 0x1cf   : > { %v605_v52 = vmax.f32 %v601_v51, 1e-24  ;;  %v630_v53 = vmax.f32 %v620_v50, 1e-24 }
 0x1d1   : > { %1403 = vrsqrt.f32 %v605_v52 }
 0x1d2   : > { %v626_v55 = vpop.xlane.xlu0 %625  ;;  %v623_v56 = vpop.xlane.xlu1 %622  ;;  %1405 = vrsqrt.f32 %v630_v53 }
 0x1d3   : > { %v1398_v57 = vpop.eup %1397  ;;  %v632_v58 = vmax.f32 %v626_v55, 1e-24  ;;  %v631_v59 = vmax.f32 %v623_v56, 1e-24 }
 0x1d4   : > { %v610_v60 = vmul.f32 %v1398_v57, %v343_v54 }
 0x1d5   : > { %1407 = vrsqrt.f32 %v631_v59 }
 0x1d6   : > { %640 = vperm.xlu0 %1395, %v610_v60   ;;  %v629_v62 = vpop.xlane.xlu1 %628  ;;  %1409 = vrsqrt.f32 %v632_v58 }
 0x1d7   : > { %v1400_v1 = vpop.eup %1399  ;;  %v633_v2 = vmax.f32 %v629_v62, 1e-24 }
 0x1d8   : > { %v1402_v4 = vpop.eup %1401  ;;  %v611_v5 = vmul.f32 %v1400_v1, %v344_v61 }
 0x1d9   : > { %1411 = vrsqrt.f32 %v633_v2  ;;  %v612_v6 = vmul.f32 %v1402_v4, %v345_v3 }
 0x1da   : > { %645 = vperm.xlu1 %1396, %v611_v5  }
 0x1db   : > { %v1404_v7 = vpop.eup %1403 }
 0x1dc   : > { %v1406_v9 = vpop.eup %1405  ;;  %v613_v11 = vmul.f32 %v1404_v7, %v346_v8 }
 0x1dd   : > { %v662_v13 = vmul.f32 %v1406_v9, %v1757_v19  ;;  %v1314_v19 = vpack.c.bf16 %v1244_v28, %v566_v29 }
 0x1de   : > { %650 = vperm.xlu1 %1396, %v612_v6  }
 0x1df   : > { %v1408_v10 = vpop.eup %1407  ;;  %1315 = vmatprep.subr.bf16.mxu0 %v1314_v19 }
 0x1e0   : > { %v1410_v12 = vpop.eup %1409  ;;  %v663_v14 = vmul.f32 %v1408_v10, %v1753_v17  ;;  %1317 = vmatpush3.bf16.msra.mxu0 %v1314_v19 }
 0x1e1   : > { %v664_v21 = vmul.f32 %v1410_v12, %v1770_v26 }
 0x1e2   : > { %655 = vperm.xlu1 %1396, %v613_v11   ;;  %v1302_v16 = vpack.c.bf16 %v663_v14, %v662_v13 }
 0x1e3   : > { %v1412_v15 = vpop.eup %1411 }
 0x1e4   : > { %v665_v23 = vmul.f32 %v1412_v15, %v1763_v22  ;;  %1304 = vmatprep.subr.msk.bf16.mxu1 %vm1303_vm3, %v1302_v16 }
 0x1e5   : > { %1307 = vmatpush3.bf16.xpose.msk.msra.mxu1 %vm1303_vm3, %v1302_v16 }
 0x1e6   : > { %v1308_v25 = vpack.c.bf16 %v665_v23, %v664_v21  ;;  %v339_v23 = vld [vmem:[%s1921_s4] sm:$0xff] }
 0x1e8   : > { %1310 = vmatprep.subr.msk.bf16.mxu1 %vm1303_vm3, %v1308_v25 }
 0x1ed   : > { %1313 = vmatpush3.bf16.xpose.msk.msra.mxu1 %vm1303_vm3, %v1308_v25 }
 0x255   : > { %v641_v17 = vpop.permute.xlu0 %640 }
 0x256   : > { %v658_v30 = vmul.f32 %v641_v17, %v1759_v20  ;;  %v1318_v20 = vpack.c.bf16 %v1247_v35, %v576_v36 }
 0x258   : > { %1256 = vmatprep.mubr.msk.f32.mxu1 %vm589_vm2, %v658_v30  ;;  %1319 = vmatprep.subr.bf16.mxu0 %v1318_v20 }
 0x259   : > { %v646_v31 = vpop.permute.xlu1 %645  ;;  %1321 = vmatpush3.bf16.msra.mxu0 %v1318_v20 }
 0x25a   : > { %v659_v26 = vmul.f32 %v1755_v18, %v646_v31  ;;  %v340_v31 = vld [vmem:[%s1921_s4 + $0x8] sm:$0xff] }
 0x25c   : > { %1257 = vmatmul.mubr.msk.f32.vlgmr.msra.gmra.mrb[8].mxu1 %vm589_vm2, %v659_v26  ;;  %v341_v26 = vld [vmem:[%s1921_s4 + $0x10] sm:$0xff] }
 0x25d   : > { %v651_v22 = vpop.permute.xlu1 %650 }
 0x25e   : > { %v660_v32 = vmul.f32 %v651_v22, %v1772_v27  ;;  %v342_v22 = vld [vmem:[%s1921_s4 + $0x18] sm:$0xff] }
 0x260   : > { %1259 = vmatprep.mubr.msk.f32.mxu1 %vm589_vm2, %v660_v32 }
 0x261   : > { %v656_v33 = vpop.permute.xlu1 %655 }
 0x262   : > { %v661_v34 = vmul.f32 %v1767_v24, %v656_v33  ;;  %v349_v24 = vld [vmem:[#allocation5 + $0x10] sm:$0xff] }
 0x264   : > { %1260 = vmatmul.mubr.msk.f32.gmra.mrb[10].mxu1 %vm589_vm2, %v661_v34 }
 0x32f   : > { %v1258_v18 = vpop.f32.mrb[8].mxu1 }
 0x330   : > { %v762_v39 = vadd.f32 %v1258_v18, %v348_v37  ;;  %v756_v40 = vpop.f32.mrb[9].mxu1 }
 0x331   : > { %v757_v41 = vadd.f32 %v756_v40, %v347_v38 }
 0x332   : > { %v778_v27 = vsel %vm357_vm0, %v762_v39, -inf }
 0x333   : > { %779 = vmax.xlane.f32.xlu0 %v778_v27  ;;  %v775_v42 = vsel %vm357_vm0, %v757_v41, -inf }
 0x334   : > { %776 = vmax.xlane.f32.xlu1 %v775_v42 }
 0x337   : > { %v1261_v43 = vpop.f32.mrb[10].mxu1 }
 0x338   : > { %v766_v45 = vpop.f32.mrb[11].mxu1  ;;  %v772_v47 = vadd.f32 %v1261_v43, %v350_v44 }
 0x339   : > { %v767_v46 = vadd.f32 %v766_v45, %v349_v24 }
 0x33a   : > { %v784_v49 = vsel %vm357_vm0, %v772_v47, -inf }
 0x33b   : > { %v781_v48 = vsel %vm357_vm0, %v767_v46, -inf }
 0x33c   : > { %782 = vmax.xlane.f32.xlu1 %v781_v48 }
 0x340   : > { %785 = vmax.xlane.f32.xlu1 %v784_v49 }
 0x3c0   : > { %v780_v50 = vpop.xlane.xlu0 %779 }
 0x3c1   : > { %v788_v51 = vsub.f32 %v762_v39, %v780_v50  ;;  %v777_v52 = vpop.xlane.xlu1 %776 }
 0x3c2   : > { %v787_v53 = vsub.f32 %v757_v41, %v777_v52 }
 0x3c3   : > { %v793_v54 = vmul.f32 1.442695, %v788_v51 }
 0x3c4   : > { %v791_v55 = vmul.f32 1.442695, %v787_v53 }
 0x3c6   : > { %1413 = vpow2.f32 %v791_v55 }
 0x3c7   : > { %1415 = vpow2.f32 %v793_v54 }
 0x3c9   : > { %v783_v56 = vpop.xlane.xlu1 %782 }
 0x3ca   : > { %v789_v57 = vsub.f32 %v767_v46, %v783_v56 }
 0x3cc   : > { %v795_v58 = vmul.f32 1.442695, %v789_v57 }
 0x3cd   : > { %v786_v59 = vpop.xlane.xlu1 %785 }
 0x3ce   : > { %1417 = vpow2.f32 %v795_v58  ;;  %v790_v60 = vsub.f32 %v772_v47, %v786_v59 }
 0x3d0   : > { %v1414_v61 = vpop.eup %1413  ;;  %v797_v62 = vmul.f32 1.442695, %v790_v60 }
 0x3d1   : > { %v799_v63 = vsel %vm357_vm0, %v1414_v61, 0.0  ;;  %v1416_v0 = vpop.eup %1415 }
 0x3d2   : > { %1419 = vpow2.f32 %v797_v62  ;;  %800 = vadd.xlane.f32.xlu1 %v799_v63  ;;  %v802_v1 = vsel %vm357_vm0, %v1416_v0, 0.0 }
 0x3d6   : > { %803 = vadd.xlane.f32.xlu1 %v802_v1 }
 0x3d8   : > { %v1418_v2 = vpop.eup %1417 }
 0x3d9   : > { %v805_v3 = vsel %vm357_vm0, %v1418_v2, 0.0 }
 0x3da   : > { %806 = vadd.xlane.f32.xlu0 %v805_v3 }
 0x3dc   : > { %v1420_v4 = vpop.eup %1419 }
 0x3dd   : > { %v808_v5 = vsel %vm357_vm0, %v1420_v4, 0.0 }
 0x3de   : > { %809 = vadd.xlane.f32.xlu1 %v808_v5 }
 0x45f   : > { %v801_v6 = vpop.xlane.xlu1 %800 }
 0x460   : > { %1421 = vrcp.f32 %v801_v6 }
 0x463   : > { %v804_v7 = vpop.xlane.xlu1 %803 }
 0x464   : > { %1423 = vrcp.f32 %v804_v7 }
 0x467   : > { %v807_v8 = vpop.xlane.xlu0 %806 }
 0x468   : > { %1425 = vrcp.f32 %v807_v8 }
 0x46a   : > { %v1422_v9 = vpop.eup %1421 }
 0x46b   : > { %v810_v10 = vpop.xlane.xlu1 %809  ;;  %v815_v11 = vmul.f32 %v1422_v9, %v1414_v61 }
 0x46c   : > { %1427 = vrcp.f32 %v810_v10 }
 0x46d   : > { %1270 = vmatprep.mubr.msk.f32.mxu0 %vm357_vm0, %v815_v11 }
 0x46e   : > { %v1424_v12 = vpop.eup %1423 }
 0x46f   : > { %v816_v13 = vmul.f32 %v1424_v12, %v1416_v0 }
 0x471   : > { %1271 = vmatmul.mubr.msk.f32.vlgmr.msra.gmra.mrb[4].mxu0 %vm357_vm0, %v816_v13 }
 0x472   : > { %v1426_v14 = vpop.eup %1425 }
 0x473   : > { %v817_v15 = vmul.f32 %v1426_v14, %v1418_v2 }
 0x475   : > { %1273 = vmatprep.mubr.msk.f32.mxu0 %vm357_vm0, %v817_v15 }
 0x476   : > { %v1428_v16 = vpop.eup %1427 }
 0x477   : > { %v818_v21 = vmul.f32 %v1428_v16, %v1420_v4 }
 0x479   : > { %1274 = vmatmul.mubr.msk.f32.gmra.mrb[6].mxu0 %vm357_vm0, %v818_v21 }
 0x47a   : > { %1284 = vmatprep.mubr.msk.f32.mxu0 %vm357_vm0, %v339_v23 }
 0x544   : > { %v1272_v25 = vpop.f32.mrb[4].mxu0 }
 0x545   : > { %v897_v28 = vpop.f32.mrb[5].mxu0 }
 0x546   : > { %v1322_v29 = vpack.c.bf16 %v1272_v25, %v897_v28 }
 0x548   : > { %1323 = vmatprep.subr.bf16.mxu0 %v1322_v29 }
 0x549   : > { %1325 = vmatpush3.bf16.msra.mxu0 %v1322_v29 }
 0x54c   : > { %v1275_v19 = vpop.f32.mrb[6].mxu0 }
 0x54d   : > { %v907_v17 = vpop.f32.mrb[7].mxu0 }
 0x54e   : > { %v1326_v30 = vpack.c.bf16 %v1275_v19, %v907_v17 }
 0x550   : > { %1327 = vmatprep.subr.bf16.mxu0 %v1326_v30 }
 0x551   : > { %1329 = vmatpush3.bf16.msra.mxu0 %v1326_v30 }
 0x554   : > { %1285 = vmatmul.mubr.msk.f32.vlgmr.msra.gmra.mrb[8].mxu0 %vm357_vm0, %v340_v31 }
 0x555   : > { %1287 = vmatprep.mubr.msk.f32.mxu0 %vm357_vm0, %v341_v26 }
 0x558   : > { %1288 = vmatmul.mubr.msk.f32.gmra.mrb[10].mxu0 %vm357_vm0, %v342_v22 }
 0x627   : > { %v1286_v32 = vpop.f32.mrb[8].mxu0 }
 0x628   : > { %1014 = vst.msk [vmem:[%s316_s10 + $0x8] sm:$0xff] %vm589_vm2, %v1286_v32  ;;  %v994_v33 = vpop.f32.mrb[9].mxu0 }
 0x629   : > { %1013 = vst.msk [vmem:[%s316_s10] sm:$0xff] %vm589_vm2, %v994_v33 }
 0x62b   : > { %v1289_v34 = vpop.f32.mrb[10].mxu0 }
 0x62c   : > { %1016 = vst.msk [vmem:[%s316_s10 + $0x18] sm:$0xff] %vm589_vm2, %v1289_v34  ;;  %v1004_v35 = vpop.f32.mrb[11].mxu0 }
 0x62d   : > { %1015 = vst.msk [vmem:[%s316_s10 + $0x10] sm:$0xff] %vm589_vm2, %v1004_v35 }
 0x62e   : > { %1498 = shalt.err (!%p1495_p11)
}
 0x62f   : > { %s1499_s23 = scalar_lea.hbm %s1872_s13, 512  ;;  %s1503_s9 = scalar_lea.hbm %s1924_s7, 1024 }
 0x630   : > { %p1500_p13 = scmp.ne.s32.totalorder %s1872_s13, %s1499_s23  ;;  %p1504_p6 = scmp.lt.u32.totalorder %s1872_s13, %s1924_s7 }
 0x631   : > { %p1505_p9 = scmp.lt.u32.totalorder %s1503_s9, %s1499_s23  ;;  %p1507_p12 = scmp.lt.u32.totalorder %s1499_s23, %s1872_s13 }
 0x632   : > { %p1501_p5 = pnand %p1500_p13, %p1938_p1 }
 0x633   : > { %p1506_p10 = por %p1505_p9, %p1504_p6 }
 0x634   : > { %p1502_p0 = pneg %p1501_p5 }
 0x635   : > { %p1508_p2 = por %p1507_p12, %p1506_p10 }
 0x637   : > { %p1509_p3 = pnand %p1508_p2, %p1502_p0 }
 0x639   : > { %1512 = shalt.err (!%p1509_p3)
}
 0x63a   : > { %s1563_s16 = smov 128   ;;  %s1564_s18 = smov 8  }
 0x63b   : > { %1338 = dma.vmem_to_hbm [thread:$0]  (%p1938_p1), %s1867_s19, 512, %s1872_s13, %s1876_s17, %s1563_s16, %s1563_s16, %s1564_s18  }
 0x63c PF: > { %p1355_p4 = scmp.ge.s32.totalorder %s1555_s27, 2  ;;  %s1046_s14 = sand.u32 1, %s1543_s24  }
 0x63d   : > { %p1939_p7 = scmp.ne.s32.totalorder %s1930_s12, 0  ;;  %s1047_s28 = scalar_lea.sflag [#allocation4], %s1046_s14 }
 0x63f   : > { %p1348_p8 = pnand %p1355_p4, %p1939_p7 }
 0x641   : > { %1538 = dma.done.wait (!%p1348_p8), %s1047_s28, 512  }
 0x642   : > { %1540 = vsyncadd (!%p1348_p8), %s1047_s28, 4294966784  ;;  %s1940_s20 = sld [smem:[#allocation11_spill]]  ;;  %p19_p11 = scmp.ge.s32.totalorder %s1630_s30, 4  }
 0x643   : > { %s1941_s24 = smov %s1547_s25  ;;  %s1942_s25 = smov %s1551_s26 }
 0x644   : > { %s1944_s27 = smov %s1630_s30  ;;  %21 = sbr.rel (!%p19_p11) target bundleno = 5 (0x5), region = 95 }
 0x648   : > { %s1943_s26 = smov %s1940_s20 }
 0x64b   :  { %1052 = vsyncpa [#allocation3], 1 }
 0x64c   :  { %1054 = vsyncpa [#allocation3 + $0x1], 1 }
 0x64d   :  { %1055 = vsyncpa [#allocation6], 1 }
 0x64e   :  { %1056 = vsyncpa [#allocation4], 1 }
 0x64f   :  { %1058 = vsyncpa [#allocation4 + $0x1], 1 }

</bundles_post_ra>
